<compile_context>
chip_gen: v5e
topology: v5e:2x2
jax: 0.10.0
libtpu: 0.0.40
codegen_flags: <defaults>
</compile_context>

<pallas_src>
import functools
import math

import jax
import jax.numpy as jnp
from jax.experimental import pallas as pl
from jax.experimental.pallas import tpu as pltpu


def _mha_body(q_ref, k_ref, v_ref, wq_ref, wk_ref, wv_ref, wo_ref,
              out_ref, score_ref, k_scr, v_scr, attn_scr,
              *, num_heads, head_dim, compute_dtype):
    cdt = compute_dtype
    norm = 1.0 / math.sqrt(head_dim)

    # Project K/V for ALL heads once per batch (qi == 0) into persistent VMEM
    # scratch; every subsequent query tile of this batch reuses the cache.
    @pl.when(pl.program_id(1) == 0)
    def _():
        k_scr[...] = jnp.dot(k_ref[...].astype(cdt), wk_ref[...],
                             preferred_element_type=jnp.float32).astype(cdt)
        v_scr[...] = jnp.dot(v_ref[...].astype(cdt), wv_ref[...],
                             preferred_element_type=jnp.float32).astype(cdt)

    # Fused Q projection for all heads (MXU-dense, N = E); softmax scale folded
    # into Q once here instead of scaling every (TQ, S) score block.
    Q = (jnp.dot(q_ref[...].astype(cdt), wq_ref[...],
                 preferred_element_type=jnp.float32) * norm).astype(cdt)   # (TQ, E)

    # TODO(synk): for very large H, switch to lax.fori_loop over heads to bound
    # live ranges; static unroll keeps slicing fully static for small head_dim.
    for h in range(num_heads):
        lo = h * head_dim
        hi = lo + head_dim
        Qh = Q[:, lo:hi]            # (TQ, A)
        Kh = k_scr[:, lo:hi]        # (S,  A)  cached projection
        Vh = v_scr[:, lo:hi]        # (S,  A)

        # Q @ K^T without materializing a transposed K tile.
        s = jax.lax.dot_general(
            Qh, Kh,
            dimension_numbers=(((1,), (1,)), ((), ())),
            preferred_element_type=jnp.float32)                   # (TQ, S) f32

        # Numerically stable softmax with an EXACT reciprocal so stored scores
        # sum to 1 within f32 rounding.
        m = jnp.max(s, axis=-1, keepdims=True)
        e = jnp.exp(s - m)
        p = e * (1.0 / jnp.sum(e, axis=-1, keepdims=True))        # (TQ, S) f32

        if score_ref is not None:
            score_ref[h] = p.astype(score_ref.dtype)

        # Slice-store this head's output into the f32 accumulator (plain
        # stores; avoids a lane-dim concatenate and keeps only one head live).
        attn_scr[:, lo:hi] = jnp.dot(p.astype(cdt), Vh,
                                     preferred_element_type=jnp.float32)

    # Fused output projection: concatenated heads never round-trip HBM.
    out_ref[...] = jnp.dot(attn_scr[...].astype(cdt), wo_ref[...],
                           preferred_element_type=jnp.float32).astype(out_ref.dtype)


def _mha_kernel_scores(q_ref, k_ref, v_ref, wq_ref, wk_ref, wv_ref, wo_ref,
                       out_ref, score_ref, k_scr, v_scr, attn_scr, **kw):
    _mha_body(q_ref, k_ref, v_ref, wq_ref, wk_ref, wv_ref, wo_ref,
              out_ref, score_ref, k_scr, v_scr, attn_scr, **kw)


def _mha_kernel_noscores(q_ref, k_ref, v_ref, wq_ref, wk_ref, wv_ref, wo_ref,
                         out_ref, k_scr, v_scr, attn_scr, **kw):
    _mha_body(q_ref, k_ref, v_ref, wq_ref, wk_ref, wv_ref, wo_ref,
              out_ref, None, k_scr, v_scr, attn_scr, **kw)


def _vmem_capacity_bytes():
    try:
        info = pltpu.get_tpu_info()
        cap = getattr(info, "vmem_capacity_bytes", None)
        if cap:
            return int(cap)
    except Exception:
        pass
    return 128 * 1024 * 1024


def _estimate_vmem_bytes(tq, S, E, H, item, with_scores):
    q_blk = 2 * tq * E * item                        # query tile (double-buffered)
    kv_blk = 2 * 2 * S * E * item                    # streamed K/V input blocks
    w_blk = 2 * 4 * E * E * item                     # four weight matrices
    out_blk = 2 * tq * E * item                      # output tile
    score_blk = (2 * H * tq * S * 4) if with_scores else 0
    kv_scr = 2 * S * E * item                        # cached K/V projections
    acc_scr = tq * E * 4                             # f32 head accumulator
    live = 3 * tq * S * 4 + 2 * tq * E * 4           # s/e/p + Q f32 live values
    return q_blk + kv_blk + w_blk + out_blk + score_blk + kv_scr + acc_scr + live


def _choose_q_tile(S, E, H, item, with_scores, budget):
    # Divisors of S (<= 512) that respect the (8, 128) sublane rule.
    cands = [d for d in range(S, 0, -1)
             if S % d == 0 and d <= 512 and (d % 8 == 0 or d == S)]
    if not cands:
        cands = [S]
    for tq in cands:
        if _estimate_vmem_bytes(tq, S, E, H, item, with_scores) <= budget:
            return tq
    # TODO(synk): pad/mask ragged sequence lengths; fall back to smallest tile.
    return cands[-1]


def multi_head_attention(query, key, value, wq, wk, wv, w_out, *,
                         return_scores=True, score_layout="BSSH",
                         compute_dtype=None):
    """
    query/key/value: [B, S, E]
    wq, wk, wv     : [H, E, A]  (per-head projection, laid out for x @ W)
    w_out          : [E, E]     (output projection, laid out for x @ W)
    return_scores  : if False, a score-free kernel variant is compiled (no
                     O(B*H*S^2) writeback at all) and None is returned.
    score_layout   : "BSSH" (reference torch.stack(..., dim=-1) layout) or
                     "BHSS" (kernel-native, skips the big wrapper transpose).
    compute_dtype  : optional matmul-operand dtype (e.g. jnp.bfloat16) —
                     accumulation stays f32 via preferred_element_type.
    """
    B, S, E = query.shape
    H, _, A = wq.shape
    assert H * A == E

    cdt = jnp.dtype(compute_dtype) if compute_dtype is not None else query.dtype

    # Concatenate per-head projections along the output dim: column block
    # [h*A:(h+1)*A] of W_cat is head h, so x @ W_cat == cat_h(x @ W_h).
    wq_cat = jnp.transpose(wq, (1, 0, 2)).reshape(E, E).astype(cdt)
    wk_cat = jnp.transpose(wk, (1, 0, 2)).reshape(E, E).astype(cdt)
    wv_cat = jnp.transpose(wv, (1, 0, 2)).reshape(E, E).astype(cdt)
    wo = w_out.astype(cdt)

    item = jnp.dtype(cdt).itemsize
    cap = _vmem_capacity_bytes()
    TQ = _choose_q_tile(S, E, H, item, return_scores, budget=int(cap * 0.6))
    n_q = S // TQ
    mib = 1024 * 1024
    vmem_limit = max(32 * mib, int(min(cap - 16 * mib, 96 * mib)))

    q_spec = pl.BlockSpec((None, TQ, E), lambda b, qi: (b, qi, 0))
    kv_spec = pl.BlockSpec((None, S, E), lambda b, qi: (b, 0, 0))
    w_spec = pl.BlockSpec((E, E), lambda b, qi: (0, 0))
    out_spec = pl.BlockSpec((None, TQ, E), lambda b, qi: (b, qi, 0))

    scratch_shapes = [
        pltpu.VMEM((S, E), cdt),            # cached K projection (per batch)
        pltpu.VMEM((S, E), cdt),            # cached V projection (per batch)
        pltpu.VMEM((TQ, E), jnp.float32),   # concatenated-head accumulator
    ]

    common = dict(num_heads=H, head_dim=A, compute_dtype=cdt)
    compiler_params = pltpu.CompilerParams(
        # Batch axis may be megacore-sharded; the query-tile axis must stay
        # sequential ("arbitrary") because K/V are cached at qi == 0.
        dimension_semantics=("parallel", "arbitrary"),
        vmem_limit_bytes=vmem_limit,
    )

    if return_scores:
        out, scores = pl.pallas_call(
            functools.partial(_mha_kernel_scores, **common),
            out_shape=(
                jax.ShapeDtypeStruct((B, S, E), query.dtype),
                jax.ShapeDtypeStruct((B, H, S, S), jnp.float32),
            ),
            grid_spec=pltpu.PrefetchScalarGridSpec(
                num_scalar_prefetch=0,
                grid=(B, n_q),
                in_specs=[q_spec, kv_spec, kv_spec,
                          w_spec, w_spec, w_spec, w_spec],
                out_specs=[
                    out_spec,
                    pl.BlockSpec((None, H, TQ, S), lambda b, qi: (b, 0, qi, 0)),
                ],
                scratch_shapes=scratch_shapes,
            ),
            compiler_params=compiler_params,
        )(query, key, value, wq_cat, wk_cat, wv_cat, wo)
        if score_layout == "BHSS":
            return out, scores
        # Reference layout torch.stack(..., dim=-1): [B, S_q, S_k, H].
        # Pass score_layout="BHSS" to skip this O(B*H*S^2) transpose.
        return out, jnp.transpose(scores, (0, 2, 3, 1))

    out = pl.pallas_call(
        functools.partial(_mha_kernel_noscores, **common),
        out_shape=jax.ShapeDtypeStruct((B, S, E), query.dtype),
        grid_spec=pltpu.PrefetchScalarGridSpec(
            num_scalar_prefetch=0,
            grid=(B, n_q),
            in_specs=[q_spec, kv_spec, kv_spec,
                      w_spec, w_spec, w_spec, w_spec],
            out_specs=out_spec,
            scratch_shapes=scratch_shapes,
        ),
        compiler_params=compiler_params,
    )(query, key, value, wq_cat, wk_cat, wv_cat, wo)
    return out, None


def _reference(query, key, value, wq, wk, wv, w_out):
    """Pure-JAX reference mirroring the PyTorch forward (eval mode)."""
    B, S, E = query.shape
    H, _, A = wq.shape
    attns, scores = [], []
    for h in range(H):
        Q = query @ wq[h]
        K = key @ wk[h]
        V = value @ wv[h]
        s = (Q @ jnp.swapaxes(K, 1, 2)) / math.sqrt(A)
        p = jax.nn.softmax(s, axis=-1)
        attns.append(p @ V)
        scores.append(p)
    attn_cat = jnp.concatenate(attns, axis=-1)
    score_stack = jnp.stack(scores, axis=-1)
    out = attn_cat @ w_out
    return out, score_stack


if __name__ == "__main__":
    B, S, E, H = 2, 8, 32, 4
    A = E // H

    key0 = jax.random.PRNGKey(0)
    kq, kk, kv, kwq, kwk, kwv, kwo = jax.random.split(key0, 7)

    query = jax.random.normal(kq, (B, S, E), dtype=jnp.float32)
    key_ = jax.random.normal(kk, (B, S, E), dtype=jnp.float32)
    value = jax.random.normal(kv, (B, S, E), dtype=jnp.float32)

    # Per-head projection weights, kernel layout [H, E, A] (x @ W).
    scale = 1.0 / math.sqrt(E)
    wq = jax.random.uniform(kwq, (H, E, A), jnp.float32, -scale, scale)
    wk = jax.random.uniform(kwk, (H, E, A), jnp.float32, -scale, scale)
    wv = jax.random.uniform(kwv, (H, E, A), jnp.float32, -scale, scale)
    w_out = jax.random.uniform(kwo, (E, E), jnp.float32, -scale, scale)

    # Variant with attention scores (reference layout [B, S_q, S_k, H]).
    out, attn_scores = multi_head_attention(query, key_, value, wq, wk, wv, w_out)
    out = jax.block_until_ready(out)
    attn_scores = jax.block_until_ready(attn_scores)

    # Score-free fast variant (no (B,H,S,S) writeback at all).
    out_fast, no_scores = multi_head_attention(
        query, key_, value, wq, wk, wv, w_out, return_scores=False)
    out_fast = jax.block_until_ready(out_fast)

    ref_out, ref_scores = _reference(query, key_, value, wq, wk, wv, w_out)
    assert out.shape == (B, S, E)
    assert attn_scores.shape == (B, S, S, H)
    assert no_scores is None
    assert jnp.allclose(out, ref_out, atol=5e-3, rtol=5e-3)
    assert jnp.allclose(attn_scores, ref_scores, atol=5e-3, rtol=5e-3)
    assert jnp.allclose(out_fast, ref_out, atol=5e-3, rtol=5e-3)

    print("KERNEL_OK")
</pallas_src>

<mosaic_0001>
module attributes {stable_mosaic.version = 11 : i64} {
  func.func @_mha_kernel_scores(%arg0: i32, %arg1: i32, %arg2: memref<1x8x32xf32, #tpu.memory_space<vmem>>, %arg3: memref<1x8x32xf32, #tpu.memory_space<vmem>>, %arg4: memref<1x8x32xf32, #tpu.memory_space<vmem>>, %arg5: memref<32x32xf32, #tpu.memory_space<vmem>>, %arg6: memref<32x32xf32, #tpu.memory_space<vmem>>, %arg7: memref<32x32xf32, #tpu.memory_space<vmem>>, %arg8: memref<32x32xf32, #tpu.memory_space<vmem>>, %arg9: memref<1x8x32xf32, #tpu.memory_space<vmem>>, %arg10: memref<1x4x8x8xf32, #tpu.memory_space<vmem>>, %arg11: memref<8x32xf32, #tpu.memory_space<vmem>>, %arg12: memref<8x32xf32, #tpu.memory_space<vmem>>, %arg13: memref<8x32xf32, #tpu.memory_space<vmem>>) attributes {dimension_semantics = [#tpu.dimension_semantics<parallel>, #tpu.dimension_semantics<arbitrary>], iteration_bounds = array<i64: 2, 1>, scalar_prefetch = 0 : i64, scratch_operands = 3 : i64, tpu.core_type = #tpu.core_type<tc>, window_params = [{transform_indices = @transform_0, window_bounds = array<i64: 1, 8, 32>}, {transform_indices = @transform_1, window_bounds = array<i64: 1, 8, 32>}, {transform_indices = @transform_2, window_bounds = array<i64: 1, 8, 32>}, {pipeline_mode = #tpu.pipeline_mode<synchronous>, transform_indices = @transform_3, window_bounds = array<i64: 32, 32>}, {pipeline_mode = #tpu.pipeline_mode<synchronous>, transform_indices = @transform_4, window_bounds = array<i64: 32, 32>}, {pipeline_mode = #tpu.pipeline_mode<synchronous>, transform_indices = @transform_5, window_bounds = array<i64: 32, 32>}, {pipeline_mode = #tpu.pipeline_mode<synchronous>, transform_indices = @transform_6, window_bounds = array<i64: 32, 32>}, {transform_indices = @transform_7, window_bounds = array<i64: 1, 8, 32>}, {transform_indices = @transform_8, window_bounds = array<i64: 1, 4, 8, 8>}]} {
    %c0_i32 = arith.constant 0 : i32
    %0 = arith.cmpi eq, %arg1, %c0_i32 : i32
    %1 = arith.extui %0 : i1 to i32
    %c0_i32_0 = arith.constant 0 : i32
    %2 = arith.cmpi ne, %1, %c0_i32_0 : i32
    scf.if %2 {
      %c0_68 = arith.constant 0 : index
      %c0_69 = arith.constant 0 : index
      %c0_70 = arith.constant 0 : index
      %95 = vector.load %arg3[%c0_68, %c0_69, %c0_70] : memref<1x8x32xf32, #tpu.memory_space<vmem>>, vector<1x8x32xf32>
      %96 = vector.shape_cast %95 : vector<1x8x32xf32> to vector<8x32xf32>
      %c0_71 = arith.constant 0 : index
      %c0_72 = arith.constant 0 : index
      %97 = vector.load %arg6[%c0_71, %c0_72] : memref<32x32xf32, #tpu.memory_space<vmem>>, vector<32x32xf32>
      %cst_73 = arith.constant dense<0.000000e+00> : vector<8x32xf32>
      %98 = tpu.matmul %96, %97, %cst_73 {dimension_numbers = #tpu.dot_dimension_numbers<[1], [0], [0], [1], [0, 0, 1, 1], [], []>} : vector<8x32xf32>, vector<32x32xf32>, vector<8x32xf32> -> vector<8x32xf32>
      %c0_74 = arith.constant 0 : index
      %c0_75 = arith.constant 0 : index
      %99 = vector.load %arg11[%c0_74, %c0_75] : memref<8x32xf32, #tpu.memory_space<vmem>>, vector<8x32xf32>
      tpu.vector_store %arg11[%c0_74, %c0_75], %98 {strides = array<i32>} : memref<8x32xf32, #tpu.memory_space<vmem>>, vector<8x32xf32>,
      %c0_76 = arith.constant 0 : index
      %c0_77 = arith.constant 0 : index
      %c0_78 = arith.constant 0 : index
      %100 = vector.load %arg4[%c0_76, %c0_77, %c0_78] : memref<1x8x32xf32, #tpu.memory_space<vmem>>, vector<1x8x32xf32>
      %101 = vector.shape_cast %100 : vector<1x8x32xf32> to vector<8x32xf32>
      %c0_79 = arith.constant 0 : index
      %c0_80 = arith.constant 0 : index
      %102 = vector.load %arg7[%c0_79, %c0_80] : memref<32x32xf32, #tpu.memory_space<vmem>>, vector<32x32xf32>
      %cst_81 = arith.constant dense<0.000000e+00> : vector<8x32xf32>
      %103 = tpu.matmul %101, %102, %cst_81 {dimension_numbers = #tpu.dot_dimension_numbers<[1], [0], [0], [1], [0, 0, 1, 1], [], []>} : vector<8x32xf32>, vector<32x32xf32>, vector<8x32xf32> -> vector<8x32xf32>
      %c0_82 = arith.constant 0 : index
      %c0_83 = arith.constant 0 : index
      %104 = vector.load %arg12[%c0_82, %c0_83] : memref<8x32xf32, #tpu.memory_space<vmem>>, vector<8x32xf32>
      tpu.vector_store %arg12[%c0_82, %c0_83], %103 {strides = array<i32>} : memref<8x32xf32, #tpu.memory_space<vmem>>, vector<8x32xf32>,
    } else {
    }
    %c0 = arith.constant 0 : index
    %c0_1 = arith.constant 0 : index
    %c0_2 = arith.constant 0 : index
    %3 = vector.load %arg2[%c0, %c0_1, %c0_2] : memref<1x8x32xf32, #tpu.memory_space<vmem>>, vector<1x8x32xf32>
    %4 = vector.shape_cast %3 : vector<1x8x32xf32> to vector<8x32xf32>
    %c0_3 = arith.constant 0 : index
    %c0_4 = arith.constant 0 : index
    %5 = vector.load %arg5[%c0_3, %c0_4] : memref<32x32xf32, #tpu.memory_space<vmem>>, vector<32x32xf32>
    %cst = arith.constant dense<0.000000e+00> : vector<8x32xf32>
    %6 = tpu.matmul %4, %5, %cst {dimension_numbers = #tpu.dot_dimension_numbers<[1], [0], [0], [1], [0, 0, 1, 1], [], []>} : vector<8x32xf32>, vector<32x32xf32>, vector<8x32xf32> -> vector<8x32xf32>
    %cst_5 = arith.constant 0.353553385 : f32
    %7 = vector.broadcast %cst_5 : f32 to vector<8x32xf32>
    %8 = arith.mulf %6, %7 : vector<8x32xf32>
    %9 = vector.extract_strided_slice %8 {offsets = [0, 0], sizes = [8, 8], strides = [1, 1]} : vector<8x32xf32> to vector<8x8xf32>
    %c0_6 = arith.constant 0 : index
    %c0_7 = arith.constant 0 : index
    %10 = vector.load %arg11[%c0_6, %c0_7] : memref<8x32xf32, #tpu.memory_space<vmem>>, vector<8x8xf32>
    %c0_8 = arith.constant 0 : index
    %c0_9 = arith.constant 0 : index
    %11 = vector.load %arg12[%c0_8, %c0_9] : memref<8x32xf32, #tpu.memory_space<vmem>>, vector<8x8xf32>
    %cst_10 = arith.constant dense<0.000000e+00> : vector<8x8xf32>
    %12 = tpu.matmul %9, %10, %cst_10 {dimension_numbers = #tpu.dot_dimension_numbers<[1], [1], [0], [0], [0, 0, 1, 0], [], []>} : vector<8x8xf32>, vector<8x8xf32>, vector<8x8xf32> -> vector<8x8xf32>
    %cst_11 = arith.constant dense<0xFF800000> : vector<8xf32>
    %13 = vector.multi_reduction <maximumf>, %12, %cst_11 [1] : vector<8x8xf32> to vector<8xf32>
    %14 = vector.shape_cast %13 : vector<8xf32> to vector<8x1xf32>
    %15 = vector.broadcast %14 : vector<8x1xf32> to vector<8x8xf32>
    %16 = arith.subf %12, %15 : vector<8x8xf32>
    %17 = math.exp %16 : vector<8x8xf32>
    %cst_12 = arith.constant dense<0.000000e+00> : vector<8xf32>
    %18 = vector.multi_reduction <add>, %17, %cst_12 [1] : vector<8x8xf32> to vector<8xf32>
    %19 = vector.shape_cast %18 : vector<8xf32> to vector<8x1xf32>
    %cst_13 = arith.constant 1.000000e+00 : f32
    %20 = vector.broadcast %cst_13 : f32 to vector<8x1xf32>
    %21 = arith.divf %20, %19 : vector<8x1xf32>
    %22 = vector.broadcast %21 : vector<8x1xf32> to vector<8x8xf32>
    %23 = arith.mulf %17, %22 : vector<8x8xf32>
    %c0_14 = arith.constant 0 : index
    %c0_15 = arith.constant 0 : index
    %c0_16 = arith.constant 0 : index
    %c0_17 = arith.constant 0 : index
    %24 = vector.load %arg10[%c0_14, %c0_15, %c0_16, %c0_17] : memref<1x4x8x8xf32, #tpu.memory_space<vmem>>, vector<1x1x8x8xf32>
    %25 = vector.shape_cast %24 : vector<1x1x8x8xf32> to vector<8x8xf32>
    %26 = vector.shape_cast %23 : vector<8x8xf32> to vector<1x1x8x8xf32>
    tpu.vector_store %arg10[%c0_14, %c0_15, %c0_16, %c0_17], %26 {strides = array<i32>} : memref<1x4x8x8xf32, #tpu.memory_space<vmem>>, vector<1x1x8x8xf32>,
    %cst_18 = arith.constant dense<0.000000e+00> : vector<8x8xf32>
    %27 = tpu.matmul %23, %11, %cst_18 {dimension_numbers = #tpu.dot_dimension_numbers<[1], [0], [0], [1], [0, 0, 1, 1], [], []>} : vector<8x8xf32>, vector<8x8xf32>, vector<8x8xf32> -> vector<8x8xf32>
    %c0_19 = arith.constant 0 : index
    %c0_20 = arith.constant 0 : index
    %28 = vector.load %arg13[%c0_19, %c0_20] : memref<8x32xf32, #tpu.memory_space<vmem>>, vector<8x8xf32>
    tpu.vector_store %arg13[%c0_19, %c0_20], %27 {strides = array<i32>} : memref<8x32xf32, #tpu.memory_space<vmem>>, vector<8x8xf32>,
    %29 = vector.extract_strided_slice %8 {offsets = [0, 8], sizes = [8, 8], strides = [1, 1]} : vector<8x32xf32> to vector<8x8xf32>
    %c0_21 = arith.constant 0 : index
    %c8 = arith.constant 8 : index
    %30 = vector.load %arg11[%c0_21, %c8] : memref<8x32xf32, #tpu.memory_space<vmem>>, vector<8x8xf32>
    %c0_22 = arith.constant 0 : index
    %c8_23 = arith.constant 8 : index
    %31 = vector.load %arg12[%c0_22, %c8_23] : memref<8x32xf32, #tpu.memory_space<vmem>>, vector<8x8xf32>
    %cst_24 = arith.constant dense<0.000000e+00> : vector<8x8xf32>
    %32 = tpu.matmul %29, %30, %cst_24 {dimension_numbers = #tpu.dot_dimension_numbers<[1], [1], [0], [0], [0, 0, 1, 0], [], []>} : vector<8x8xf32>, vector<8x8xf32>, vector<8x8xf32> -> vector<8x8xf32>
    %cst_25 = arith.constant dense<0xFF800000> : vector<8xf32>
    %33 = vector.multi_reduction <maximumf>, %32, %cst_25 [1] : vector<8x8xf32> to vector<8xf32>
    %34 = vector.shape_cast %33 : vector<8xf32> to vector<8x1xf32>
    %35 = vector.broadcast %34 : vector<8x1xf32> to vector<8x8xf32>
    %36 = arith.subf %32, %35 : vector<8x8xf32>
    %37 = math.exp %36 : vector<8x8xf32>
    %cst_26 = arith.constant dense<0.000000e+00> : vector<8xf32>
    %38 = vector.multi_reduction <add>, %37, %cst_26 [1] : vector<8x8xf32> to vector<8xf32>
    %39 = vector.shape_cast %38 : vector<8xf32> to vector<8x1xf32>
    %cst_27 = arith.constant 1.000000e+00 : f32
    %40 = vector.broadcast %cst_27 : f32 to vector<8x1xf32>
    %41 = arith.divf %40, %39 : vector<8x1xf32>
    %42 = vector.broadcast %41 : vector<8x1xf32> to vector<8x8xf32>
    %43 = arith.mulf %37, %42 : vector<8x8xf32>
    %c0_28 = arith.constant 0 : index
    %c1 = arith.constant 1 : index
    %c0_29 = arith.constant 0 : index
    %c0_30 = arith.constant 0 : index
    %44 = vector.load %arg10[%c0_28, %c1, %c0_29, %c0_30] : memref<1x4x8x8xf32, #tpu.memory_space<vmem>>, vector<1x1x8x8xf32>
    %45 = vector.shape_cast %44 : vector<1x1x8x8xf32> to vector<8x8xf32>
    %46 = vector.shape_cast %43 : vector<8x8xf32> to vector<1x1x8x8xf32>
    tpu.vector_store %arg10[%c0_28, %c1, %c0_29, %c0_30], %46 {strides = array<i32>} : memref<1x4x8x8xf32, #tpu.memory_space<vmem>>, vector<1x1x8x8xf32>,
    %cst_31 = arith.constant dense<0.000000e+00> : vector<8x8xf32>
    %47 = tpu.matmul %43, %31, %cst_31 {dimension_numbers = #tpu.dot_dimension_numbers<[1], [0], [0], [1], [0, 0, 1, 1], [], []>} : vector<8x8xf32>, vector<8x8xf32>, vector<8x8xf32> -> vector<8x8xf32>
    %c0_32 = arith.constant 0 : index
    %c8_33 = arith.constant 8 : index
    %48 = vector.load %arg13[%c0_32, %c8_33] : memref<8x32xf32, #tpu.memory_space<vmem>>, vector<8x8xf32>
    tpu.vector_store %arg13[%c0_32, %c8_33], %47 {strides = array<i32>} : memref<8x32xf32, #tpu.memory_space<vmem>>, vector<8x8xf32>,
    %49 = vector.extract_strided_slice %8 {offsets = [0, 16], sizes = [8, 8], strides = [1, 1]} : vector<8x32xf32> to vector<8x8xf32>
    %c0_34 = arith.constant 0 : index
    %c16 = arith.constant 16 : index
    %50 = vector.load %arg11[%c0_34, %c16] : memref<8x32xf32, #tpu.memory_space<vmem>>, vector<8x8xf32>
    %c0_35 = arith.constant 0 : index
    %c16_36 = arith.constant 16 : index
    %51 = vector.load %arg12[%c0_35, %c16_36] : memref<8x32xf32, #tpu.memory_space<vmem>>, vector<8x8xf32>
    %cst_37 = arith.constant dense<0.000000e+00> : vector<8x8xf32>
    %52 = tpu.matmul %49, %50, %cst_37 {dimension_numbers = #tpu.dot_dimension_numbers<[1], [1], [0], [0], [0, 0, 1, 0], [], []>} : vector<8x8xf32>, vector<8x8xf32>, vector<8x8xf32> -> vector<8x8xf32>
    %cst_38 = arith.constant dense<0xFF800000> : vector<8xf32>
    %53 = vector.multi_reduction <maximumf>, %52, %cst_38 [1] : vector<8x8xf32> to vector<8xf32>
    %54 = vector.shape_cast %53 : vector<8xf32> to vector<8x1xf32>
    %55 = vector.broadcast %54 : vector<8x1xf32> to vector<8x8xf32>
    %56 = arith.subf %52, %55 : vector<8x8xf32>
    %57 = math.exp %56 : vector<8x8xf32>
    %cst_39 = arith.constant dense<0.000000e+00> : vector<8xf32>
    %58 = vector.multi_reduction <add>, %57, %cst_39 [1] : vector<8x8xf32> to vector<8xf32>
    %59 = vector.shape_cast %58 : vector<8xf32> to vector<8x1xf32>
    %cst_40 = arith.constant 1.000000e+00 : f32
    %60 = vector.broadcast %cst_40 : f32 to vector<8x1xf32>
    %61 = arith.divf %60, %59 : vector<8x1xf32>
    %62 = vector.broadcast %61 : vector<8x1xf32> to vector<8x8xf32>
    %63 = arith.mulf %57, %62 : vector<8x8xf32>
    %c0_41 = arith.constant 0 : index
    %c2 = arith.constant 2 : index
    %c0_42 = arith.constant 0 : index
    %c0_43 = arith.constant 0 : index
    %64 = vector.load %arg10[%c0_41, %c2, %c0_42, %c0_43] : memref<1x4x8x8xf32, #tpu.memory_space<vmem>>, vector<1x1x8x8xf32>
    %65 = vector.shape_cast %64 : vector<1x1x8x8xf32> to vector<8x8xf32>
    %66 = vector.shape_cast %63 : vector<8x8xf32> to vector<1x1x8x8xf32>
    tpu.vector_store %arg10[%c0_41, %c2, %c0_42, %c0_43], %66 {strides = array<i32>} : memref<1x4x8x8xf32, #tpu.memory_space<vmem>>, vector<1x1x8x8xf32>,
    %cst_44 = arith.constant dense<0.000000e+00> : vector<8x8xf32>
    %67 = tpu.matmul %63, %51, %cst_44 {dimension_numbers = #tpu.dot_dimension_numbers<[1], [0], [0], [1], [0, 0, 1, 1], [], []>} : vector<8x8xf32>, vector<8x8xf32>, vector<8x8xf32> -> vector<8x8xf32>
    %c0_45 = arith.constant 0 : index
    %c16_46 = arith.constant 16 : index
    %68 = vector.load %arg13[%c0_45, %c16_46] : memref<8x32xf32, #tpu.memory_space<vmem>>, vector<8x8xf32>
    tpu.vector_store %arg13[%c0_45, %c16_46], %67 {strides = array<i32>} : memref<8x32xf32, #tpu.memory_space<vmem>>, vector<8x8xf32>,
    %69 = vector.extract_strided_slice %8 {offsets = [0, 24], sizes = [8, 8], strides = [1, 1]} : vector<8x32xf32> to vector<8x8xf32>
    %c0_47 = arith.constant 0 : index
    %c24 = arith.constant 24 : index
    %70 = vector.load %arg11[%c0_47, %c24] : memref<8x32xf32, #tpu.memory_space<vmem>>, vector<8x8xf32>
    %c0_48 = arith.constant 0 : index
    %c24_49 = arith.constant 24 : index
    %71 = vector.load %arg12[%c0_48, %c24_49] : memref<8x32xf32, #tpu.memory_space<vmem>>, vector<8x8xf32>
    %cst_50 = arith.constant dense<0.000000e+00> : vector<8x8xf32>
    %72 = tpu.matmul %69, %70, %cst_50 {dimension_numbers = #tpu.dot_dimension_numbers<[1], [1], [0], [0], [0, 0, 1, 0], [], []>} : vector<8x8xf32>, vector<8x8xf32>, vector<8x8xf32> -> vector<8x8xf32>
    %cst_51 = arith.constant dense<0xFF800000> : vector<8xf32>
    %73 = vector.multi_reduction <maximumf>, %72, %cst_51 [1] : vector<8x8xf32> to vector<8xf32>
    %74 = vector.shape_cast %73 : vector<8xf32> to vector<8x1xf32>
    %75 = vector.broadcast %74 : vector<8x1xf32> to vector<8x8xf32>
    %76 = arith.subf %72, %75 : vector<8x8xf32>
    %77 = math.exp %76 : vector<8x8xf32>
    %cst_52 = arith.constant dense<0.000000e+00> : vector<8xf32>
    %78 = vector.multi_reduction <add>, %77, %cst_52 [1] : vector<8x8xf32> to vector<8xf32>
    %79 = vector.shape_cast %78 : vector<8xf32> to vector<8x1xf32>
    %cst_53 = arith.constant 1.000000e+00 : f32
    %80 = vector.broadcast %cst_53 : f32 to vector<8x1xf32>
    %81 = arith.divf %80, %79 : vector<8x1xf32>
    %82 = vector.broadcast %81 : vector<8x1xf32> to vector<8x8xf32>
    %83 = arith.mulf %77, %82 : vector<8x8xf32>
    %c0_54 = arith.constant 0 : index
    %c3 = arith.constant 3 : index
    %c0_55 = arith.constant 0 : index
    %c0_56 = arith.constant 0 : index
    %84 = vector.load %arg10[%c0_54, %c3, %c0_55, %c0_56] : memref<1x4x8x8xf32, #tpu.memory_space<vmem>>, vector<1x1x8x8xf32>
    %85 = vector.shape_cast %84 : vector<1x1x8x8xf32> to vector<8x8xf32>
    %86 = vector.shape_cast %83 : vector<8x8xf32> to vector<1x1x8x8xf32>
    tpu.vector_store %arg10[%c0_54, %c3, %c0_55, %c0_56], %86 {strides = array<i32>} : memref<1x4x8x8xf32, #tpu.memory_space<vmem>>, vector<1x1x8x8xf32>,
    %cst_57 = arith.constant dense<0.000000e+00> : vector<8x8xf32>
    %87 = tpu.matmul %83, %71, %cst_57 {dimension_numbers = #tpu.dot_dimension_numbers<[1], [0], [0], [1], [0, 0, 1, 1], [], []>} : vector<8x8xf32>, vector<8x8xf32>, vector<8x8xf32> -> vector<8x8xf32>
    %c0_58 = arith.constant 0 : index
    %c24_59 = arith.constant 24 : index
    %88 = vector.load %arg13[%c0_58, %c24_59] : memref<8x32xf32, #tpu.memory_space<vmem>>, vector<8x8xf32>
    tpu.vector_store %arg13[%c0_58, %c24_59], %87 {strides = array<i32>} : memref<8x32xf32, #tpu.memory_space<vmem>>, vector<8x8xf32>,
    %c0_60 = arith.constant 0 : index
    %c0_61 = arith.constant 0 : index
    %89 = vector.load %arg13[%c0_60, %c0_61] : memref<8x32xf32, #tpu.memory_space<vmem>>, vector<8x32xf32>
    %c0_62 = arith.constant 0 : index
    %c0_63 = arith.constant 0 : index
    %90 = vector.load %arg8[%c0_62, %c0_63] : memref<32x32xf32, #tpu.memory_space<vmem>>, vector<32x32xf32>
    %cst_64 = arith.constant dense<0.000000e+00> : vector<8x32xf32>
    %91 = tpu.matmul %89, %90, %cst_64 {dimension_numbers = #tpu.dot_dimension_numbers<[1], [0], [0], [1], [0, 0, 1, 1], [], []>} : vector<8x32xf32>, vector<32x32xf32>, vector<8x32xf32> -> vector<8x32xf32>
    %c0_65 = arith.constant 0 : index
    %c0_66 = arith.constant 0 : index
    %c0_67 = arith.constant 0 : index
    %92 = vector.load %arg9[%c0_65, %c0_66, %c0_67] : memref<1x8x32xf32, #tpu.memory_space<vmem>>, vector<1x8x32xf32>
    %93 = vector.shape_cast %92 : vector<1x8x32xf32> to vector<8x32xf32>
    %94 = vector.shape_cast %91 : vector<8x32xf32> to vector<1x8x32xf32>
    tpu.vector_store %arg9[%c0_65, %c0_66, %c0_67], %94 {strides = array<i32>} : memref<1x8x32xf32, #tpu.memory_space<vmem>>, vector<1x8x32xf32>,
    return
  }
  func.func @transform_0(%arg0: i32, %arg1: i32) -> (i32, i32, i32) {
    %c0_i32 = arith.constant 0 : i32
    %c0_i32_0 = arith.constant 0 : i32
    return %arg0, %arg1, %c0_i32 : i32, i32, i32
  }
  func.func @transform_1(%arg0: i32, %arg1: i32) -> (i32, i32, i32) {
    %c0_i32 = arith.constant 0 : i32
    %c0_i32_0 = arith.constant 0 : i32
    %c0_i32_1 = arith.constant 0 : i32
    return %arg0, %c0_i32, %c0_i32_0 : i32, i32, i32
  }
  func.func @transform_2(%arg0: i32, %arg1: i32) -> (i32, i32, i32) {
    %c0_i32 = arith.constant 0 : i32
    %c0_i32_0 = arith.constant 0 : i32
    %c0_i32_1 = arith.constant 0 : i32
    return %arg0, %c0_i32, %c0_i32_0 : i32, i32, i32
  }
  func.func @transform_3(%arg0: i32, %arg1: i32) -> (i32, i32) {
    %c0_i32 = arith.constant 0 : i32
    %c0_i32_0 = arith.constant 0 : i32
    %c0_i32_1 = arith.constant 0 : i32
    return %c0_i32, %c0_i32_0 : i32, i32
  }
  func.func @transform_4(%arg0: i32, %arg1: i32) -> (i32, i32) {
    %c0_i32 = arith.constant 0 : i32
    %c0_i32_0 = arith.constant 0 : i32
    %c0_i32_1 = arith.constant 0 : i32
    return %c0_i32, %c0_i32_0 : i32, i32
  }
  func.func @transform_5(%arg0: i32, %arg1: i32) -> (i32, i32) {
    %c0_i32 = arith.constant 0 : i32
    %c0_i32_0 = arith.constant 0 : i32
    %c0_i32_1 = arith.constant 0 : i32
    return %c0_i32, %c0_i32_0 : i32, i32
  }
  func.func @transform_6(%arg0: i32, %arg1: i32) -> (i32, i32) {
    %c0_i32 = arith.constant 0 : i32
    %c0_i32_0 = arith.constant 0 : i32
    %c0_i32_1 = arith.constant 0 : i32
    return %c0_i32, %c0_i32_0 : i32, i32
  }
  func.func @transform_7(%arg0: i32, %arg1: i32) -> (i32, i32, i32) {
    %c0_i32 = arith.constant 0 : i32
    %c0_i32_0 = arith.constant 0 : i32
    return %arg0, %arg1, %c0_i32 : i32, i32, i32
  }
  func.func @transform_8(%arg0: i32, %arg1: i32) -> (i32, i32, i32, i32) {
    %c0_i32 = arith.constant 0 : i32
    %c0_i32_0 = arith.constant 0 : i32
    %c0_i32_1 = arith.constant 0 : i32
    return %arg0, %c0_i32, %arg1, %c0_i32_0 : i32, i32, i32, i32
  }
}

</mosaic_0001>

<bundles_post_ra>
// kernel: tpu_custom_call.1
= control target key start
LH: loop header
LB: loop body
LE: loop exit
PB: predicated region body
PF: predicated region fallthrough
CT: control target
= control target key end

     0   :  { %s2096_s0 = inlined_call_operand.hbm [shape: f32[2,8,32], index: 0, kind: input, shape index: {}]   ;;  %s2097_s1 = inlined_call_operand.hbm [shape: f32[2,8,32], index: 1, kind: input, shape index: {}]   ;;  %s2098_s2 = inlined_call_operand.hbm [shape: f32[2,8,32], index: 2, kind: input, shape index: {}]   ;;  %s2099_s3 = inlined_call_operand.hbm [shape: f32[32,32], index: 3, kind: input, shape index: {}]   ;;  %s2100_s4 = inlined_call_operand.hbm [shape: f32[32,32], index: 4, kind: input, shape index: {}]   ;;  %s2101_s5 = inlined_call_operand.hbm [shape: f32[32,32], index: 5, kind: input, shape index: {}]   ;;  %s2102_s6 = inlined_call_operand.hbm [shape: f32[32,32], index: 6, kind: input, shape index: {}]   ;;  %s2103_s7 = inlined_call_operand.hbm [shape: f32[2,8,32], index: 7, kind: output, shape index: {0}]   ;;  %s2104_s8 = inlined_call_operand.hbm [shape: f32[2,4,8,8], index: 8, kind: output, shape index: {1}]  }
   0x1   :  { %2115 = sst [smem:[#allocation31_spill]] %s2096_s0 }
   0x2   :  { %2116 = sst [smem:[#allocation32_spill]] %s2097_s1 }
   0x3   :  { %2117 = sst [smem:[#allocation33_spill]] %s2099_s3 }
   0x4   :  { %2118 = sst [smem:[#allocation34_spill]] %s2100_s4 }
   0x5   :  { %2119 = sst [smem:[#allocation35_spill]] %s2101_s5 }
   0x6   :  { %2120 = sst [smem:[#allocation36_spill]] %s2102_s6 }
   0x7   :  { %14 = vsyncpa [#allocation6], 0 }
   0x8   :  { %16 = vsyncpa [#allocation6 + $0x1], 0 }
   0x9   :  { %17 = vsyncpa [#allocation9], 0 }
   0xa   :  { %19 = vsyncpa [#allocation9 + $0x1], 0 }
   0xb   :  { %20 = vsyncpa [#allocation12], 0 }
   0xc   :  { %21 = vsyncpa [#allocation15], 0 }
   0xd   :  { %22 = vsyncpa [#allocation7], 0 }
   0xe   :  { %24 = vsyncpa [#allocation7 + $0x1], 0 }
   0xf   :  { %25 = vsyncpa [#allocation19], 0 }
  0x10   :  { %27 = vsyncpa [#allocation19 + $0x1], 0  ;;  %s1794_s27 = smov 0   ;;  %s1796_s28 = smov 0  }
  0x11   :  { %s1798_s29 = smov 0   ;;  %s1800_s30 = smov 0  }
  0x12   :  { %s1802_s9 = smov 0   ;;  %s1804_s10 = smov 0  }
  0x13 LB: > { %2121 = sst [smem:[#allocation26_spill]] %s1730_s9  ;;  %s1825_s11 = sadd.s32 4294967295, %s1734_s10   ;;  %s1734_s10 = sphi %s1804_s10, %s33_s10   ;;  %s1730_s9 = sphi %s1802_s9, %s2146_s9   ;;  %s1726_s30 = sphi %s1800_s30, %s2145_s30   ;;  %s1722_s29 = sphi %s1798_s29, %s2149_s29   ;;  %s1718_s28 = sphi %s1796_s28, %s2148_s28   ;;  %s1714_s27 = sphi %s1794_s27, %s2147_s27  }
  0x14   : > { %2122 = sst [smem:[#allocation27_spill]] %s1734_s10  ;;  %p1206_p0 = scmp.ge.s32.totalorder %s1734_s10, 1 }
  0x15   : > { %p68_p1 = scmp.eq.s32.totalorder %s1825_s11, 0  ;;  %p270_p2 = scmp.lt.s32.totalorder %s1734_s10, 3 }
  0x16   : > { %s2123_s3 = sld [smem:[#allocation33_spill]]  ;;  %s1736_s16 = smov [#allocation11]  }
  0x17   : > { %p1833_p3 = pnand %p1206_p0, %p270_p2  ;;  %s283_s17 = sshll.u32 %s1736_s16, 4  ;;  %s284_s17 = int_to_ptr.vmem [resolvable:$true] %s283_s17 }
  0x18   : > { %p1211_p6 = scmp.ge.s32.totalorder %s1734_s10, 2  ;;  %s2126_s5 = sld [smem:[#allocation35_spill]] }
  0x19   : > { %p1281_p4 = pneg %p1833_p3  ;;  %s2105_s22 = smov 128  }
  0x1a   : > { %s2107_s23 = smov 8   ;;  %s1739_s24 = smov [#allocation14]  }
  0x1b   : > { %p1841_p5 = pnand %p1281_p4, %p68_p1  ;;  %s311_s25 = sshll.u32 %s1739_s24, 4  ;;  %s312_s25 = int_to_ptr.vmem [resolvable:$true] %s311_s25 }
  0x1c   : > { %s281_s14 = sshll.u32 %s2123_s3, 4  ;;  %s1205_s26 = sadd.s32 4294967294, %s1734_s10   ;;  %s282_s14 = int_to_ptr.hbm [resolvable:$true] %s281_s14 }
  0x1d   : > { %1284 = dma.hbm_to_vmem [thread:$0]  (!%p1841_p5), %s282_s14, 512, %s284_s17, [#allocation12], %s2105_s22, %s2105_s22, %s2107_s23  }
  0x1e   : > { %s309_s21 = sshll.u32 %s2126_s5, 4  ;;  %s45_s12 = sadd.s32 1, %s1730_s9  ;;  %s310_s21 = int_to_ptr.hbm [resolvable:$true] %s309_s21 }
  0x1f   : > { %1290 = dma.hbm_to_vmem [thread:$0]  (!%p1841_p5), %s310_s21, 512, %s312_s25, [#allocation15], %s2105_s22, %s2105_s22, %s2107_s23  }
  0x20   : > { %p47_p7 = scmp.ge.s32.totalorder %s45_s12, 2  ;;  %s54_s13 = sadd.s32 1, %s1722_s29 }
  0x21   : > { %p61_p8 = scmp.ne.s32.totalorder %s1722_s29, %s1718_s28  ;;  %p62_p9 = scmp.eq.s32.totalorder %s1734_s10, 0 }
  0x22   : > { %s2151_s12 = smov (%p47_p7, %s45_s12), 0  ;;  %p67_p11 = scmp.ne.s32.totalorder %s1718_s28, %s1714_s27 }
  0x23   : > { %2127 = sst [smem:[#allocation28_spill]] %s2151_s12  ;;  %p1867_p10 = por %p62_p9, %p61_p8 }
  0x24   : > { %s49_s16 = ssub.s32 %s1730_s9, %s2151_s12  ;;  %p229_p12 = scmp.eq.s32.totalorder %s1825_s11, 1 }
  0x25   : > { %p52_p13 = scmp.eq.s32.totalorder %s49_s16, 0  ;;  %p1878_p0 = por %p68_p1, %p67_p11 }
  0x26   : > { %p1882_p2 = por %p229_p12, %p61_p8  ;;  %p235_p4 = scmp.eq.s32.totalorder %s1205_s26, 1 }
  0x27   : > { %s1887_s20 = scalar_select %p52_p13, %s1722_s29, %s54_s13  }
  0x28   : > { %p1889_p7 = por %p235_p4, %p67_p11  ;;  %p1315_p9 = scmp.lt.s32.totalorder %s1734_s10, 2 }
  0x29   : > { %2131 = sst [smem:[#allocation29_spill]] %s1887_s20  ;;  %s2111_s24 = sand.u32 1, %s1722_s29  }
  0x2a   : > { %s2132_s21 = scalar_select %p1889_p7, 1, 0 }
  0x2b   : > { %s1896_s25 = sshll.u32 %s1730_s9, 3  ;;  %s1900_s16 = sshll.u32 %s2111_s24, 3 }
  0x2c   : > { %2133 = sst [smem:[#allocation30_spill]] %s2132_s21  ;;  %p1904_p8 = pnand %p1315_p9, %p1867_p10 }
  0x2d   : > { %s359_s26 = sand.u32 1, %s1734_s10   ;;  %s2135_s1 = sld [smem:[#allocation32_spill]] }
  0x2e   : > { %s363_s5 = scalar_lea.vmem [#allocation8], %s1900_s16  ;;  %s2136_s4 = sld [smem:[#allocation34_spill]] }
  0x2f   : > { %s371_s12 = sshll.u32 %s363_s5, 4  ;;  %s360_s21 = scalar_lea.sflag [#allocation9], %s359_s26  ;;  %s372_s12 = int_to_ptr.vmem [resolvable:$true] %s371_s12 }
  0x30   : > { %s1740_s10 = smov [#allocation13]   ;;  %s2137_s6 = sld [smem:[#allocation36_spill]] }
  0x31   : > { %s297_s23 = sshll.u32 %s1740_s10, 4  ;;  %s2138_s5 = smov 8   ;;  %s298_s23 = int_to_ptr.vmem [resolvable:$true] %s297_s23 }
  0x32   : > { %s2139_s24 = smov 128   ;;  %s1741_s26 = smov [#allocation16]  }
  0x33   : > { %s367_s3 = scalar_lea.hbm %s2135_s1, %s1896_s25  ;;  %s2140_s0 = sld [smem:[#allocation31_spill]] }
  0x34   : > { %s369_s9 = sshll.u32 %s367_s3, 4  ;;  %s295_s20 = sshll.u32 %s2136_s4, 4  ;;  %s370_s9 = int_to_ptr.hbm [resolvable:$true] %s369_s9  ;;  %s296_s20 = int_to_ptr.hbm [resolvable:$true] %s295_s20 }
  0x35   : > { %1300 = dma.hbm_to_vmem [thread:$0]  (!%p1904_p8), %s370_s9, 128, %s372_s12, %s360_s21  }
  0x36   : > { %s323_s3 = sshll.u32 %s2137_s6, 4  ;;  %s325_s9 = sshll.u32 %s1741_s26, 4  ;;  %s324_s3 = int_to_ptr.hbm [resolvable:$true] %s323_s3  ;;  %s326_s9 = int_to_ptr.vmem [resolvable:$true] %s325_s9 }
  0x37   : > { %1287 = dma.hbm_to_vmem [thread:$0]  (!%p1841_p5), %s296_s20, 512, %s298_s23, [#allocation12], %s2139_s24, %s2139_s24, %s2138_s5  }
  0x38   : > { %1293 = dma.hbm_to_vmem [thread:$0]  (!%p1841_p5), %s324_s3, 512, %s326_s9, [#allocation15], %s2139_s24, %s2139_s24, %s2138_s5  }
  0x39   : > { %s348_s10 = scalar_lea.hbm %s2140_s0, %s1896_s25  ;;  %s343_s13 = scalar_lea.vmem [#allocation5], %s1900_s16 }
  0x3a   : > { %s350_s1 = sshll.u32 %s348_s10, 4  ;;  %s352_s4 = sshll.u32 %s343_s13, 4  ;;  %s351_s1 = int_to_ptr.hbm [resolvable:$true] %s350_s1  ;;  %s353_s4 = int_to_ptr.vmem [resolvable:$true] %s352_s4 }
  0x3b   : > { %s2141_s6 = sand.u32 1, %s1722_s29   ;;  %s386_s12 = scalar_lea.hbm %s2098_s2, %s1896_s25 }
  0x3c   : > { %s340_s20 = scalar_lea.sflag [#allocation6], %s2141_s6  ;;  %s388_s14 = sshll.u32 %s386_s12, 4  ;;  %s389_s14 = int_to_ptr.hbm [resolvable:$true] %s388_s14 }
  0x3d   : > { %1297 = dma.hbm_to_vmem [thread:$0]  (!%p1904_p8), %s351_s1, 128, %s353_s4, %s340_s20  }
  0x3e   : > { %s382_s0 = scalar_lea.vmem [#allocation10], %s1900_s16  ;;  %399 = sbr.rel (%p1833_p3) target bundleno = 1127 (0x467), region = 48 }
  0x3f   : > { %s390_s18 = sshll.u32 %s382_s0, 4  ;;  %s1951_s3 = sand.u32 (!%p1833_p3), 1, %s1718_s28   ;;  %s391_s18 = int_to_ptr.vmem [resolvable:$true] %s390_s18 }
  0x40   : > { %1303 = dma.hbm_to_vmem [thread:$0]  (!%p1904_p8), %s389_s14, 128, %s391_s18, %s360_s21  }
  0x41   : > { %s1954_s4 = sshll.u32 (!%p1833_p3), %s1951_s3, 3  ;;  %s402_s6 = scalar_lea.sflag (!%p1833_p3), [#allocation6], %s1951_s3 }
  0x42   : > { %s405_s25 = scalar_lea.vmem (!%p1833_p3), [#allocation5], %s1954_s4 }
  0x43   : > { %1689 = dma.done.wait (%p1878_p0), %s402_s6, 128  }
  0x44   : > { %1691 = vsyncadd (%p1878_p0), %s402_s6, 4294967168  ;;  %s411_s0 = sand.u32 1, %s1825_s11   ;;  %s415_s22 = scalar_lea.vmem [#allocation8], %s1954_s4 }
  0x45   : > { %s412_s15 = scalar_lea.sflag [#allocation9], %s411_s0 }
  0x46   : > { %1693 = dma.done.wait (%p1878_p0), %s412_s15, 256  }
  0x47   : > { %1695 = vsyncadd (%p1878_p0), %s412_s15, 4294967040  ;;  %s425_s21 = scalar_lea.vmem [#allocation10], %s1954_s4 }
  0x48   : > { %1697 = dma.done.wait (%p68_p1), [#allocation12], 1024  }
  0x49   : > { %1699 = vsyncadd (%p68_p1), [#allocation12], 4294966272 }
  0x4a   : > { %1701 = dma.done.wait (%p68_p1), [#allocation15], 1024  }
  0x4b   : > { %1703 = vsyncadd (%p68_p1), [#allocation15], 4294966272  ;;  %v502_v0 = vld [vmem:[#allocation13 + $0x18] sm:$0xff]  ;;  %v501_v1 = vld [vmem:[#allocation13 + $0x10] sm:$0xff]  ;;  %vm503_vm0 = vcmask 261120   ;;  %vm589_vm1 = vcmask 64512  }
  0x4c   : > { %v561_v2 = vld [vmem:[#allocation11 + $0x18] sm:$0xff]  ;;  %519 = vmatpush.msra.mxu0 %v502_v0  ;;  %v560_v3 = vld [vmem:[#allocation11 + $0x10] sm:$0xff]  ;;  %v500_v4 = vld [vmem:[#allocation13 + $0x8] sm:$0xff]  ;;  %s1742_s11 = smov 104   ;;  %s1743_s17 = smov 112  }
  0x4d   : > { %578 = vmatpush.msra.mxu2 %v561_v2  ;;  %v559_v5 = vld [vmem:[#allocation11 + $0x8] sm:$0xff]  ;;  %v499_v6 = vld [vmem:[#allocation13] sm:$0xff]  ;;  %v557_v9 = vld [vmem:[%s405_s25] sm:$0xff]  ;;  %s1744_s16 = smov 120   ;;  %s1227_s5 = sshll.u32 %s1951_s3, 5 }
  0x4e   : > { %520 = vmatpush.msra.mxu0 %v501_v1  ;;  %v558_v7 = vld [vmem:[#allocation11] sm:$0xff]  ;;  %v532_v22 = vld [vmem:[#allocation14 + $0x18] sm:$0xff]  ;;  %v531_v23 = vld [vmem:[#allocation14 + $0x10] sm:$0xff]  ;;  %s2016_s24 = scalar_lea.vmem [#allocation18], %s1227_s5  ;;  %s1745_s9 = smov 8  }
  0x4f   : > { %579 = vmatpush.msra.mxu2 %v560_v3  ;;  %v498_v8 = vld [vmem:[%s415_s22] sm:$0xff]  ;;  %548 = vmatpush.msra.mxu1 %v532_v22  ;;  %v528_v26 = vld [vmem:[%s425_s21] sm:$0xff]  ;;  %s1746_s10 = smov 16   ;;  %s1747_s1 = smov 24  }
  0x50   : > { %521 = vmatpush.msra.mxu0 %v500_v4  ;;  %v530_v24 = vld [vmem:[#allocation14 + $0x8] sm:$0xff]  ;;  %v529_v25 = vld [vmem:[#allocation14] sm:$0xff]  ;;  %s1254_s13 = sshll.u32 %s1726_s30, 5  ;;  %s1002_s12 = sshll.u32 %s2016_s24, 4  ;;  %s1003_s12 = int_to_ptr.vmem [resolvable:$true] %s1002_s12 }
  0x51   : > { %580 = vmatpush.msra.mxu2 %v559_v5  ;;  %549 = vmatpush.msra.mxu1 %v531_v23  ;;  %s1001_s26 = scalar_lea.hbm %s2104_s8, %s1254_s13  ;;  %s974_s18 = scalar_lea.sflag [#allocation19], %s1951_s3 }
  0x52   : > { %522 = vmatpush.msra.mxu0 %v499_v6  ;;  %s1004_s14 = sshll.u32 %s1001_s26, 4  ;;  %s1628_s22 = scalar_lea.hbm %s2104_s8, 64  ;;  %s1005_s14 = int_to_ptr.hbm [resolvable:$true] %s1004_s14 }
  0x53   : > { %581 = vmatpush.msra.mxu2 %v558_v7  ;;  %1228 = vmatmul.msk.f32.vlgmr.msra.gmra.mxu0 %vm503_vm0, %v498_v8  ;;  %s1622_s6 = sshra.s32 %s1005_s14, 4  ;;  %s1623_s6 = int_to_ptr.hbm [resolvable:$true] %s1622_s6 }
  0x54   : > { %1230 = vmatmul.msk.f32.vlgmr.msra.gmra.mxu2 %vm503_vm0, %v557_v9  ;;  %550 = vmatpush.msra.mxu1 %v530_v24  ;;  %s1624_s25 = scalar_lea.hbm %s1623_s6, 32  ;;  %p1629_p10 = scmp.lt.s32.totalorder %s1623_s6, %s2104_s8 }
  0x55   : > { %p1625_p1 = scmp.ne.s32.totalorder %s1623_s6, %s1624_s25  ;;  %p1630_p11 = scmp.lt.s32.totalorder %s1628_s22, %s1624_s25 }
  0x56   : > { %551 = vmatpush.msra.mxu1 %v529_v25 }
  0x57   : > { %1229 = vmatmul.msk.f32.vlgmr.msra.gmra.mxu1 %vm503_vm0, %v528_v26  ;;  %p1626_p3 = pnand %p1625_p1, %p1882_p2  ;;  %p1631_p12 = por %p1630_p11, %p1629_p10 }
  0x59   : > { %p1627_p5 = pneg %p1626_p3 }
  0x5b   : > { %p1632_p13 = pnand %p1631_p12, %p1627_p5 }
  0xd0   : > { %v524_v10 = vpop.f32.mrf.mxu0 }
  0xd1   : > { %527 = vst.msk [vmem:[#allocation2] sm:$0xff] %vm503_vm0, %v524_v10 }
  0xd4   : > { %v553_v38 = vpop.f32.mrf.mxu1 }
  0xd5   : > { %556 = vst.msk [vmem:[#allocation3] sm:$0xff] %vm503_vm0, %v553_v38 }
  0xd7   : > { %v583_v11 = vpop.f32.mrf.mxu2 }
  0xd8   : > { %v848_v12 = vld [vmem:[#allocation2] sm:$0xff]  ;;  %v586_v13 = vmul.f32 0.35355338, %v583_v11 }
  0xd9   : > { %853 = vrot.lane.b32.xlu2 %v848_v12, %s1742_s11  ;;  %762 = vrot.lane.b32.xlu0 %v848_v12, %s1743_s17 }
  0xda   : > { %671 = vrot.lane.b32.xlu1 %v848_v12, %s1744_s16  ;;  %1231 = vmatpush.xpose.msk.msra.mxu3 %vm589_vm1, %v848_v12 }
  0xdc   : > { %v588_v40 = vld [vmem:[#allocation3] sm:$0xff] }
  0xdd   : > { %1232 = vmatmul.msk.f32.vlgmr.msra.gmra.mxu3 %vm589_vm1, %v586_v13 }
  0xde   : > { %660 = vmatpush.msrb.mxu3 %v588_v40 }
  0xe1   : > { %850 = vrot.lane.b32.xlu2 %v586_v13, %s1742_s11  ;;  %759 = vrot.lane.b32.xlu0 %v586_v13, %s1743_s17 }
  0xe2   : > { %668 = vrot.lane.b32.xlu1 %v586_v13, %s1744_s16 }
 0x133   : > { %v854_v16 = vpop.permute.xlu2 %853 }
 0x13b   : > { %v851_v19 = vpop.permute.xlu2 %850 }
 0x14b   : > { %v763_v14 = vpop.permute.xlu0 %762 }
 0x14c   : > { %v672_v15 = vpop.permute.xlu1 %671  ;;  %1238 = vmatpush.xpose.msk.msrb.mxu2 %vm589_vm1, %v763_v14 }
 0x14d   : > { %1234 = vmatpush.xpose.msk.msrb.mxu0 %vm589_vm1, %v672_v15 }
 0x151   : > { %1242 = vmatpush.xpose.msk.msra.mxu0 %vm589_vm1, %v854_v16 }
 0x153   : > { %v760_v17 = vpop.permute.xlu0 %759 }
 0x154   : > { %v669_v18 = vpop.permute.xlu1 %668  ;;  %1239 = vmatmul.msk.f32.vlgmr.msrb.gmra.mxu2 %vm589_vm1, %v760_v17 }
 0x155   : > { %1235 = vmatmul.msk.f32.vlgmr.msrb.gmra.mxu0 %vm589_vm1, %v669_v18 }
 0x15d   : > { %1243 = vmatmul.msk.f32.vlgmr.msra.gmra.mxu0 %vm589_vm1, %v851_v19 }
 0x160   : > { %v613_v20 = vpop.f32.mrf.mxu3 }
 0x161   : > { %v616_v21 = vsel %vm589_vm1, %v613_v20, -inf }
 0x162   : > { %617 = vmax.xlane.f32.xlu0 %v616_v21 }
 0x1d2   : > { %v694_v27 = vpop.f32.mrf.mxu0 }
 0x1d3   : > { %v697_v28 = vsel %vm589_vm1, %v694_v27, -inf }
 0x1d4   : > { %698 = vmax.xlane.f32.xlu1 %v697_v28 }
 0x1d5   : > { %v618_v29 = vpop.xlane.xlu0 %617 }
 0x1d6   : > { %v619_v30 = vsub.f32 %v613_v20, %v618_v29 }
 0x1d7   : > { %v785_v31 = vpop.f32.mrf.mxu2 }
 0x1d8   : > { %v620_v32 = vmul.f32 1.442695, %v619_v30  ;;  %v788_v33 = vsel %vm589_vm1, %v785_v31, -inf }
 0x1d9   : > { %789 = vmax.xlane.f32.xlu2 %v788_v33 }
 0x1da   : > { %1382 = vpow2.f32 %v620_v32  ;;  %v876_v34 = vpop.f32.mrf.mxu0 }
 0x1db   : > { %v879_v36 = vsel %vm589_vm1, %v876_v34, -inf }
 0x1e0   : > { %v1383_v35 = vpop.eup %1382 }
 0x1e1   : > { %880 = vmax.xlane.f32.xlu2 %v879_v36  ;;  %v622_v37 = vsel %vm589_vm1, %v1383_v35, 0.0 }
 0x1e2   : > { %623 = vadd.xlane.f32.xlu0 %v622_v37 }
 0x247   : > { %v699_v39 = vpop.xlane.xlu1 %698 }
 0x248   : > { %v700_v41 = vsub.f32 %v694_v27, %v699_v39 }
 0x24a   : > { %v701_v42 = vmul.f32 1.442695, %v700_v41 }
 0x24c   : > { %1384 = vpow2.f32 %v701_v42  ;;  %v790_v43 = vpop.xlane.xlu2 %789 }
 0x24d   : > { %v791_v44 = vsub.f32 %v785_v31, %v790_v43 }
 0x24f   : > { %v792_v45 = vmul.f32 1.442695, %v791_v44 }
 0x251   : > { %1386 = vpow2.f32 %v792_v45 }
 0x252   : > { %v2003_v46 = vpop.eup %1384 }
 0x253   : > { %v703_v47 = vsel %vm589_vm1, %v2003_v46, 0.0 }
 0x254   : > { %704 = vadd.xlane.f32.xlu1 %v703_v47  ;;  %v881_v48 = vpop.xlane.xlu2 %880  ;;  %v942_v47 = vld [vmem:[#allocation16 + $0x10] sm:$0xff] }
 0x255   : > { %v882_v49 = vsub.f32 %v876_v34, %v881_v48  ;;  %v624_v50 = vpop.xlane.xlu0 %623  ;;  %v941_v48 = vld [vmem:[#allocation16 + $0x8] sm:$0xff] }
 0x256   : > { %1388 = vrcp.f32 %v624_v50  ;;  %v636_v58 = vand.u32 2147483648, %v624_v50  ;;  %v634_v61 = vand.u32 2147483647, %v624_v50  ;;  %vm630_vm3 = vweird.f32 %v624_v50 }
 0x257   : > { %v2007_v51 = vpop.eup %1386  ;;  %v883_v52 = vmul.f32 1.442695, %v882_v49  ;;  %v940_v49 = vld [vmem:[#allocation16] sm:$0xff] }
 0x258   : > { %v794_v53 = vsel %vm589_vm1, %v2007_v51, 0.0  ;;  %v637_v63 = vor.u32 1.1754944e-38, %v636_v58  ;;  %vm635_vm5 = vcmp.eq.f32.partialorder %v634_v61, 8.507059e+37 }
 0x259   : > { %1390 = vpow2.f32 %v883_v52  ;;  %795 = vadd.xlane.f32.xlu2 %v794_v53 }
 0x25c   : > { %v1389_v54 = vpop.eup %1388 }
 0x25d   : > { %v626_v55 = vmul.f32 %v1389_v54, %v624_v50  ;;  %vm631_vm2 = vweird.f32 %v1389_v54 }
 0x25e   : > { %vm632_vm4 = vmor %vm630_vm3, %vm631_vm2 }
 0x25f   : > { %v2011_v56 = vpop.eup %1390  ;;  %v627_v57 = vsub.f32 1.0, %v626_v55 }
 0x260   : > { %v885_v59 = vsel %vm589_vm1, %v2011_v56, 0.0 }
 0x261   : > { %v628_v60 = vmul.f32 %v1389_v54, %v627_v57  ;;  %886 = vadd.xlane.f32.xlu0 %v885_v59 }
 0x263   : > { %v629_v62 = vadd.f32 %v1389_v54, %v628_v60 }
 0x265   : > { %v633_v0 = vsel %vm632_vm4, %v1389_v54, %v629_v62  ;;  %vm846_vm4 = vcmask 195712  }
 0x266   : > { %v638_v1 = vsel %vm635_vm5, %v637_v63, %v633_v0  ;;  %vm937_vm5 = vcmask 261312  }
 0x267   : > { %v640_v2 = vmul.f32 %v1383_v35, %v638_v1 }
 0x269   : > { %641 = vst.msk [vmem:[%s2016_s24] sm:$0xff] %vm589_vm1, %v640_v2  ;;  %1233 = vmatmul.msk.f32.vlgmr.msrb.gmra.mxu3 %vm589_vm1, %v640_v2 }
 0x26d   : > { %725 = vrot.lane.b32.xlu1 %v588_v40, %s1744_s16 }
 0x271   : > { %816 = vrot.lane.b32.xlu2 %v588_v40, %s1743_s17 }
 0x275   : > { %907 = vrot.lane.b32.xlu0 %v588_v40, %s1742_s11 }
 0x2c7   : > { %v705_v3 = vpop.xlane.xlu1 %704 }
 0x2c8   : > { %1392 = vrcp.f32 %v705_v3  ;;  %v717_v8 = vand.u32 2147483648, %v705_v3  ;;  %v715_v11 = vand.u32 2147483647, %v705_v3  ;;  %vm711_vm7 = vweird.f32 %v705_v3 }
 0x2ca   : > { %v718_v16 = vor.u32 1.1754944e-38, %v717_v8  ;;  %vm716_vm9 = vcmp.eq.f32.partialorder %v715_v11, 8.507059e+37 }
 0x2cc   : > { %v796_v4 = vpop.xlane.xlu2 %795 }
 0x2cd   : > { %1394 = vrcp.f32 %v796_v4  ;;  %v808_v18 = vand.u32 2147483648, %v796_v4  ;;  %v806_v21 = vand.u32 2147483647, %v796_v4  ;;  %vm802_vm11 = vweird.f32 %v796_v4 }
 0x2ce   : > { %v1393_v5 = vpop.eup %1392 }
 0x2cf   : > { %v707_v6 = vmul.f32 %v1393_v5, %v705_v3  ;;  %vm712_vm6 = vweird.f32 %v1393_v5  ;;  %v809_v26 = vor.u32 1.1754944e-38, %v808_v18  ;;  %vm807_vm13 = vcmp.eq.f32.partialorder %v806_v21, 8.507059e+37 }
 0x2d0   : > { %vm713_vm8 = vmor %vm711_vm7, %vm712_vm6 }
 0x2d1   : > { %v708_v7 = vsub.f32 1.0, %v707_v6 }
 0x2d3   : > { %v1395_v9 = vpop.eup %1394  ;;  %v709_v10 = vmul.f32 %v1393_v5, %v708_v7 }
 0x2d4   : > { %v798_v12 = vmul.f32 %v1395_v9, %v796_v4  ;;  %v817_v13 = vpop.permute.xlu2 %816  ;;  %v887_v14 = vpop.xlane.xlu0 %886  ;;  %vm803_vm10 = vweird.f32 %v1395_v9 }
 0x2d5   : > { %v710_v15 = vadd.f32 %v1393_v5, %v709_v10  ;;  %1396 = vrcp.f32 %v887_v14  ;;  %837 = vmatpush.msra.mxu3 %v817_v13  ;;  %vm804_vm12 = vmor %vm802_vm11, %vm803_vm10  ;;  %v899_v32 = vand.u32 2147483648, %v887_v14  ;;  %v897_v35 = vand.u32 2147483647, %v887_v14 }
 0x2d6   : > { %v799_v17 = vsub.f32 1.0, %v798_v12  ;;  %vm893_vm15 = vweird.f32 %v887_v14 }
 0x2d7   : > { %v714_v19 = vsel %vm713_vm8, %v1393_v5, %v710_v15  ;;  %v900_v37 = vor.u32 1.1754944e-38, %v899_v32  ;;  %vm898_vm3 = vcmp.eq.f32.partialorder %v897_v35, 8.507059e+37 }
 0x2d8   : > { %v800_v20 = vmul.f32 %v1395_v9, %v799_v17  ;;  %v719_v22 = vsel %vm716_vm9, %v718_v16, %v714_v19 }
 0x2d9   : > { %v721_v23 = vmul.f32 %v2003_v46, %v719_v22  ;;  %v943_v46 = vld [vmem:[#allocation16 + $0x18] sm:$0xff] }
 0x2da   : > { %v801_v24 = vadd.f32 %v1395_v9, %v800_v20  ;;  %959 = vmatpush.msra.mxu2 %v943_v46 }
 0x2db   : > { %v1397_v25 = vpop.eup %1396  ;;  %1236 = vst.msk [vmem:[%s2016_s24 + $0x8] sm:$0xff] %vm589_vm1, %v721_v23 }
 0x2dc   : > { %v805_v27 = vsel %vm804_vm12, %v1395_v9, %v801_v24  ;;  %v889_v28 = vmul.f32 %v1397_v25, %v887_v14  ;;  %vm894_vm14 = vweird.f32 %v1397_v25  ;;  %960 = vmatpush.msra.mxu2 %v942_v47 }
 0x2dd   : > { %v810_v29 = vsel %vm807_vm13, %v809_v26, %v805_v27  ;;  %vm895_vm2 = vmor %vm893_vm15, %vm894_vm14 }
 0x2de   : > { %v890_v30 = vsub.f32 1.0, %v889_v28  ;;  %v812_v31 = vmul.f32 %v2007_v51, %v810_v29  ;;  %961 = vmatpush.msra.mxu2 %v941_v48 }
 0x2df   : > { %v726_v33 = vpop.permute.xlu1 %725 }
 0x2e0   : > { %v891_v34 = vmul.f32 %v1397_v25, %v890_v30  ;;  %746 = vmatpush.msrb.mxu1 %v726_v33  ;;  %1240 = vst.msk [vmem:[%s2016_s24 + $0x10] sm:$0xff] %vm589_vm1, %v812_v31  ;;  %1241 = vmatmul.msk.f32.vlgmr.msra.gmra.mxu3 %vm589_vm1, %v812_v31 }
 0x2e1   : > { %1237 = vmatmul.msk.f32.vlgmr.msrb.gmra.mxu1 %vm589_vm1, %v721_v23  ;;  %962 = vmatpush.msra.mxu2 %v940_v49 }
 0x2e2   : > { %v892_v36 = vadd.f32 %v1397_v25, %v891_v34 }
 0x2e4   : > { %v896_v38 = vsel %vm895_vm2, %v1397_v25, %v892_v36 }
 0x2e5   : > { %v901_v39 = vsel %vm898_vm3, %v900_v37, %v896_v38 }
 0x2e6   : > { %v903_v40 = vmul.f32 %v2011_v56, %v901_v39 }
 0x2e7   : > { %v908_v41 = vpop.permute.xlu0 %907 }
 0x2e8   : > { %928 = vmatpush.msra.mxu1 %v908_v41  ;;  %1244 = vst.msk [vmem:[%s2016_s24 + $0x18] sm:$0xff] %vm589_vm1, %v903_v40 }
 0x2e9   : > { %1245 = vmatmul.msk.f32.vlgmr.msra.gmra.mxu1 %vm589_vm1, %v903_v40 }
 0x2ec   : > { %v662_v42 = vpop.f32.mrf.mxu3 }
 0x2ed   : > { %665 = vst.msk [vmem:[#allocation4] sm:$0xff] %vm589_vm1, %v662_v42  ;;  %vm755_vm1 = vcmask 130112  }
 0x35e   : > { %v748_v43 = vpop.f32.mrf.mxu1 }
 0x35f   : > { %752 = vrot.lane.b32.xlu1 %v748_v43, %s1745_s9 }
 0x363   : > { %v839_v44 = vpop.f32.mrf.mxu3 }
 0x364   : > { %843 = vrot.lane.b32.xlu0 %v839_v44, %s1746_s10 }
 0x366   : > { %v930_v45 = vpop.f32.mrf.mxu1 }
 0x367   : > { %934 = vrot.lane.b32.xlu2 %v930_v45, %s1747_s1 }
 0x3c1   : > { %v935_v52 = vpop.permute.xlu2 %934 }
 0x3d1   : > { %v753_v50 = vpop.permute.xlu1 %752 }
 0x3d2   : > { %756 = vst.msk [vmem:[#allocation4] sm:$0xff] %vm755_vm1, %v753_v50 }
 0x3d6   : > { %v844_v51 = vpop.permute.xlu0 %843 }
 0x3d7   : > { %847 = vst.msk [vmem:[#allocation4] sm:$0xff] %vm846_vm4, %v844_v51 }
 0x3d8   : > { %938 = vst.msk [vmem:[#allocation4] sm:$0xff] %vm937_vm5, %v935_v52 }
 0x3df   : > { %v939_v53 = vld [vmem:[#allocation4] sm:$0xff] }
 0x3e0   : > { %1246 = vmatmul.msk.f32.vlgmr.msra.gmra.mxu2 %vm503_vm0, %v939_v53 }
 0x3e1   : > { %1635 = shalt.err (!%p1632_p13)
}
 0x3e2   : > { %s1748_s17 = smov 128   ;;  %s1249_s16 = sshll.u32 %s1726_s30, 3 }
 0x3e3   : > { %1278 = dma.vmem_to_hbm [thread:$0]  (%p1882_p2), %s1003_s12, 512, %s1005_s14, %s974_s18, %s1748_s17, %s1748_s17, %s1745_s9  }
 0x3e4   : > { %s985_s10 = scalar_lea.hbm %s2103_s7, %s1249_s16  ;;  %s486_s1 = scalar_lea.vmem [#allocation17], %s1954_s4 }
 0x3e5   : > { %s987_s13 = sshll.u32 %s486_s1, 4  ;;  %s989_s20 = sshll.u32 %s985_s10, 4  ;;  %s988_s13 = int_to_ptr.vmem [resolvable:$true] %s987_s13  ;;  %s990_s20 = int_to_ptr.hbm [resolvable:$true] %s989_s20 }
 0x3e6   : > { %s969_s23 = scalar_lea.sflag [#allocation7], %s1951_s3  ;;  %s1650_s26 = sshra.s32 %s990_s20, 4  ;;  %s1651_s26 = int_to_ptr.hbm [resolvable:$true] %s1650_s26 }
 0x3e7   : > { %s1652_s6 = scalar_lea.hbm %s1651_s26, 8  ;;  %s1656_s12 = scalar_lea.hbm %s2103_s7, 16 }
 0x3e8   : > { %p1653_p0 = scmp.ne.s32.totalorder %s1651_s26, %s1652_s6  ;;  %p1657_p8 = scmp.lt.s32.totalorder %s1651_s26, %s2103_s7 }
 0x3e9   : > { %p1658_p1 = scmp.lt.s32.totalorder %s1656_s12, %s1652_s6 }
 0x3ea   : > { %p1654_p4 = pnand %p1653_p0, %p1882_p2 }
 0x3eb   : > { %p1659_p3 = por %p1658_p1, %p1657_p8 }
 0x3ec   : > { %p1655_p9 = pneg %p1654_p4 }
 0x3ee   : > { %p1660_p5 = pnand %p1659_p3, %p1655_p9 }
 0x463   : > { %v964_v54 = vpop.f32.mrf.mxu2 }
 0x464   : > { %967 = vst.msk [vmem:[%s486_s1] sm:$0xff] %vm503_vm0, %v964_v54 }
 0x465   : > { %1663 = shalt.err (!%p1660_p5)
}
 0x466   : > { %1277 = dma.vmem_to_hbm [thread:$0]  (%p1882_p2), %s988_s13, 128, %s990_s20, %s969_s23  }
 0x467 PF: > { %s2143_s18 = sld [smem:[#allocation27_spill]]  ;;  %s1019_s25 = sand.u32 1, %s1714_s27  }
 0x468   : > { %p1305_p10 = pnand %p1211_p6, %p1889_p7  ;;  %s1020_s0 = scalar_lea.sflag [#allocation7], %s1019_s25 }
 0x46a   : > { %p1306_p11 = pneg %p1305_p10 }
 0x46c   : > { %1705 = dma.done.wait (%p1306_p11), %s1020_s0, 128  }
 0x46d   : > { %1707 = vsyncadd (%p1306_p11), %s1020_s0, 4294967168  ;;  %s1030_s15 = scalar_lea.sflag [#allocation19], %s1019_s25 }
 0x46e   : > { %1709 = dma.done.wait (%p1306_p11), %s1030_s15, 512  }
 0x46f   : > { %1711 = vsyncadd (%p1306_p11), %s1030_s15, 4294966784  ;;  %s33_s10 = sadd.s32 1, %s2143_s18   ;;  %s2144_s19 = sld [smem:[#allocation29_spill]] }
 0x470   : > { %p30_p12 = scmp.ge.s32.totalorder %s33_s10, 4   ;;  %s2145_s30 = sld [smem:[#allocation26_spill]] }
 0x471   : > { %s2146_s9 = sld [smem:[#allocation28_spill]]  ;;  %s2147_s27 = smov %s1718_s28 }
 0x472   : > { %s2148_s28 = smov %s1722_s29  ;;  %32 = sbr.rel (!%p30_p12) target bundleno = 19 (0x13), region = 157 }
 0x475   : > { %s2149_s29 = smov %s2144_s19 }
 0x477   :  { %1036 = vsyncpa [#allocation6], 1 }
 0x478   :  { %1038 = vsyncpa [#allocation6 + $0x1], 1 }
 0x479   :  { %1039 = vsyncpa [#allocation9], 1 }
 0x47a   :  { %1041 = vsyncpa [#allocation9 + $0x1], 1 }
 0x47b   :  { %1042 = vsyncpa [#allocation12], 1 }
 0x47c   :  { %1043 = vsyncpa [#allocation15], 1 }
 0x47d   :  { %1044 = vsyncpa [#allocation7], 1 }
 0x47e   :  { %1046 = vsyncpa [#allocation7 + $0x1], 1 }
 0x47f   :  { %1047 = vsyncpa [#allocation19], 1 }
 0x480   :  { %1049 = vsyncpa [#allocation19 + $0x1], 1 }

</bundles_post_ra>
